<compile_context>
chip_gen: v7x
topology: tpu7x:2x2x1
jax: 0.10.0
libtpu: 0.0.40
codegen_flags: <defaults>
</compile_context>

<pallas_src>
from functools import partial

import jax
import jax.numpy as jnp
from jax.experimental import pallas as pl
from jax.experimental.pallas import tpu as pltpu


def _round_up(a, b):
    return (a + b - 1) // b * b


def conv_pool_stats_kernel(w_ref, p_ref, m_ref, z_ref, r_ref, stats_ref, *, K, Cin):
    """Pass A (one lane-dense pixel tile): conv1 as a single im2col matmul,
    maxpool residual from the same patches via precomputed validity bits, and
    per-tile partial BatchNorm statistics.

    w_ref:     (Cout, K*K*Cin)   bf16 conv weight, columns ordered (kh, kw, ci)
    p_ref:     (K*K*Cin, T)      bf16 zero-padded im2col patches (cols = pixels)
    m_ref:     (1, T)            int32, bit t = "tap t lies inside the image"
    z_ref:     (Cout, T)         f32 conv output tile
    r_ref:     (Cin,  T)         bf16 maxpool residual tile
    stats_ref: (1, 2, Cout, 1)   f32 per-tile [sum, sum-of-squares] of z
    """
    # ---- conv1: one MXU matmul, contraction dim K*K*Cin >= 128, f32 accum.
    z = jnp.dot(w_ref[...], p_ref[...], preferred_element_type=jnp.float32)
    z_ref[...] = z

    # ---- partial BatchNorm statistics (global reduction finished in wrapper).
    stats_ref[0, 0] = jnp.sum(z, axis=1, keepdims=True)        # (Cout, 1)
    stats_ref[0, 1] = jnp.sum(z * z, axis=1, keepdims=True)    # (Cout, 1)

    # ---- maxpool residual from the zero-padded patches; border handling via
    # ---- precomputed packed validity bits (no div/mod, 3 tiny ops per tap).
    bits = m_ref[...]                                          # (1, T) int32
    neg = jnp.asarray(-jnp.inf, dtype=p_ref.dtype)
    r = jnp.full(r_ref.shape, neg, dtype=p_ref.dtype)
    for t in range(K * K):
        valid = ((bits >> t) & 1) != 0                         # (1, T) bool
        tap = p_ref[t * Cin:(t + 1) * Cin, :]                  # aligned static slice
        r = jnp.maximum(r, jnp.where(valid, tap, neg))
    r_ref[...] = r


def bn_lif_kernel(params_ref, z_ref, r_ref, o_ref, *, Cout):
    """Pass B (one lane-dense pixel tile): affine BN + residual + LIF spike.

    ParametricLIF (init_tau=2 -> sigmoid(w)=0.5, v_th=1, v_reset=0), single
    step from v=0:  v = 0.5 * x ; spike = (v >= 1).

    params_ref: (2*Cout, 128) f32 resident block; rows [0:Cout]=scale,
                [Cout:2*Cout]=shift (lane-dense; only column 0 is used).
    """
    scale = params_ref[0:Cout, 0:1]                            # (Cout, 1)
    shift = params_ref[Cout:2 * Cout, 0:1]                     # (Cout, 1)
    bn = z_ref[...] * scale + shift
    v = 0.5 * (bn + r_ref[...].astype(jnp.float32))
    o_ref[...] = (v >= 1.0).astype(o_ref.dtype)


def temporal_block_forward(x_nchw, conv_w, gamma, beta, *,
                           kernel_size, stride, dilation, padding,
                           eps=1e-5, tile_a=4096, tile_b=8192):
    """TemporalBlock forward.  tile_a / tile_b are the lane-dense pixel tiles
    for pass A / pass B; both are capped at the problem size and sized so the
    per-step VMEM footprint (dominated by 2 * K*K*Cin * T_A * 2 bytes of bf16
    patches) stays a few MiB on every generation (v5e 16 MiB scoped default,
    v7x 64 MiB physical)."""
    assert stride == 1, "kernel implemented for stride=1"
    N, Cin, H, W = x_nchw.shape
    Cout = conv_w.shape[0]
    assert Cin == Cout, "out + res requires n_inputs == n_outputs"
    assert Cin % 8 == 0, "per-tap static slice must be sublane aligned"
    K, dil, p = kernel_size, dilation, padding
    Ho = (H + 2 * p - dil * (K - 1) - 1) // stride + 1
    Wo = (W + 2 * p - dil * (K - 1) - 1) // stride + 1
    npix = N * Ho * Wo
    kkc = K * K * Cin

    # ---- tile sizes: lane aligned, capped at the problem, T_A divides T_B so
    # ---- both passes share one padded pixel axis (no re-pad between passes).
    T_B = min(_round_up(tile_b, 128), _round_up(npix, 128))
    T_A = min(_round_up(tile_a, 128), T_B)
    while T_B % T_A:
        T_A -= 128
    npad = _round_up(npix, T_B)
    nt_a = npad // T_A
    nt_b = npad // T_B

    x = x_nchw.astype(jnp.float32)
    xp = jnp.pad(x, ((0, 0), (0, 0), (p, p), (p, p))).astype(jnp.bfloat16)

    # im2col in transposed layout (bf16): rows = (kh, kw, ci), cols = (n, h, w).
    taps = []
    for kh in range(K):
        for kw in range(K):
            taps.append(xp[:, :, kh * dil:kh * dil + Ho, kw * dil:kw * dil + Wo])
    pt = jnp.stack(taps, axis=0)                               # (K*K, N, Cin, Ho, Wo)
    pt = pt.transpose(0, 2, 1, 3, 4).reshape(kkc, npix)
    if npad != npix:
        # zero columns: add 0 to sum/sum-of-squares, produce r=-inf, sliced off.
        pt = jnp.pad(pt, ((0, 0), (0, npad - npix)))

    # packed per-pixel tap-validity bits (replaces in-kernel div/mod + compares)
    idx = jnp.arange(npix, dtype=jnp.int32)
    ohw = idx % (Ho * Wo)
    oh = ohw // Wo
    ow = ohw % Wo
    bits = jnp.zeros((npix,), jnp.int32)
    for t in range(K * K):
        kh, kw = t // K, t % K
        ih = oh * stride + kh * dil                            # index into padded input
        iw = ow * stride + kw * dil
        ok = (ih >= p) & (ih < H + p) & (iw >= p) & (iw < W + p)
        bits = bits | (ok.astype(jnp.int32) << t)
    mask = jnp.pad(bits, (0, npad - npix)).reshape(1, npad)

    # (Cout, Cin, K, K) -> (Cout, K, K, Cin) -> (Cout, K*K*Cin), bf16
    w_t = (conv_w.astype(jnp.float32).transpose(0, 2, 3, 1)
           .reshape(Cout, kkc).astype(jnp.bfloat16))

    cparams = pltpu.CompilerParams(
        dimension_semantics=("parallel",),         # pixel axis -> 2 TCs on v7x
        vmem_limit_bytes=32 * 1024 * 1024)

    # ---- pass A: conv + residual + partial stats, tiled over pixels ----------
    z, r, stats = pl.pallas_call(
        partial(conv_pool_stats_kernel, K=K, Cin=Cin),
        grid=(nt_a,),
        in_specs=[pl.BlockSpec((Cout, kkc), lambda i: (0, 0)),
                  pl.BlockSpec((kkc, T_A), lambda i: (0, i)),
                  pl.BlockSpec((1, T_A), lambda i: (0, i))],
        out_specs=[pl.BlockSpec((Cout, T_A), lambda i: (0, i)),
                   pl.BlockSpec((Cin, T_A), lambda i: (0, i)),
                   pl.BlockSpec((1, 2, Cout, 1), lambda i: (i, 0, 0, 0))],
        out_shape=[jax.ShapeDtypeStruct((Cout, npad), jnp.float32),
                   jax.ShapeDtypeStruct((Cin, npad), jnp.bfloat16),
                   jax.ShapeDtypeStruct((nt_a, 2, Cout, 1), jnp.float32)],
        compiler_params=cparams,
    )(w_t, pt, mask)

    # ---- global BatchNorm stats (training mode: batch stats, biased variance)
    cnt = jnp.float32(npix)
    mean = jnp.sum(stats[:, 0, :, 0], axis=0) / cnt            # (Cout,)
    var = jnp.maximum(jnp.sum(stats[:, 1, :, 0], axis=0) / cnt - mean * mean, 0.0)
    scale = gamma.astype(jnp.float32) * jax.lax.rsqrt(var + eps)
    shift = beta.astype(jnp.float32) - mean * scale
    params = jnp.broadcast_to(
        jnp.concatenate([scale, shift]).reshape(2 * Cout, 1), (2 * Cout, 128))

    # ---- pass B: BN + residual + LIF threshold, larger pixel tiles -----------
    spikes = pl.pallas_call(
        partial(bn_lif_kernel, Cout=Cout),
        grid=(nt_b,),
        in_specs=[pl.BlockSpec((2 * Cout, 128), lambda i: (0, 0)),
                  pl.BlockSpec((Cout, T_B), lambda i: (0, i)),
                  pl.BlockSpec((Cin, T_B), lambda i: (0, i))],
        out_specs=pl.BlockSpec((Cout, T_B), lambda i: (0, i)),
        out_shape=jax.ShapeDtypeStruct((Cout, npad), jnp.bfloat16),
        compiler_params=cparams,
    )(params, z, r)

    out = spikes[:, :npix].astype(jnp.float32)                 # (Cout, N*Ho*Wo)
    out = out.reshape(Cout, N, Ho, Wo).transpose(1, 0, 2, 3)   # back to NCHW
    return out


def reference_forward(x_nchw, conv_w, gamma, beta, *,
                      kernel_size, stride, dilation, padding, eps=1e-5):
    """Pure-JAX f32 reference (returns spikes and pre-threshold v)."""
    conv = jax.lax.conv_general_dilated(
        x_nchw.astype(jnp.float32), conv_w.astype(jnp.float32),
        window_strides=(stride, stride), padding=[(padding, padding)] * 2,
        rhs_dilation=(dilation, dilation),
        dimension_numbers=("NCHW", "OIHW", "NCHW"))
    mean = conv.mean(axis=(0, 2, 3), keepdims=True)
    var = conv.var(axis=(0, 2, 3), keepdims=True)              # biased
    bn = (conv - mean) * jax.lax.rsqrt(var + eps)
    bn = bn * gamma.reshape(1, -1, 1, 1) + beta.reshape(1, -1, 1, 1)

    xpad = jnp.pad(x_nchw.astype(jnp.float32),
                   ((0, 0), (0, 0), (padding, padding), (padding, padding)),
                   constant_values=-jnp.inf)
    res = jax.lax.reduce_window(
        xpad, -jnp.inf, jax.lax.max,
        window_dimensions=(1, 1, kernel_size, kernel_size),
        window_strides=(1, 1, stride, stride),
        padding="VALID",
        window_dilation=(1, 1, dilation, dilation))

    v = 0.5 * (bn + res)
    return (v >= 1.0).astype(jnp.float32), v


if __name__ == "__main__":
    # Small shapes consistent with the module: n_inputs = n_outputs = 16,
    # kernel_size=3, stride=1, dilation=1, padding=1.
    N, C, H, W = 2, 16, 16, 16
    K, S, DIL, P = 3, 1, 1, 1

    key = jax.random.PRNGKey(0)
    kx, kw, kg, kb = jax.random.split(key, 4)

    x = jax.random.normal(kx, (N, C, H, W), dtype=jnp.float32)
    conv_w = jax.random.normal(kw, (C, C, K, K), dtype=jnp.float32) * (1.0 / (C * K * K) ** 0.5)
    gamma = 1.0 + 0.1 * jax.random.normal(kg, (C,), dtype=jnp.float32)
    beta = 0.1 * jax.random.normal(kb, (C,), dtype=jnp.float32)

    out = temporal_block_forward(x, conv_w, gamma, beta,
                                 kernel_size=K, stride=S, dilation=DIL, padding=P)
    out = jax.block_until_ready(out)

    ref_spikes, ref_v = reference_forward(x, conv_w, gamma, beta,
                                          kernel_size=K, stride=S, dilation=DIL, padding=P)
    assert out.shape == ref_spikes.shape == (N, C, H, W)
    # The kernel intentionally feeds the conv / maxpool bf16 inputs (f32 accum),
    # so compare spikes only where the f32 reference is clearly away from the
    # LIF threshold (bf16 rounding can move v by up to ~1e-2 near |v|~1).
    stable = jnp.abs(ref_v - 1.0) > 3e-2
    assert bool(jnp.all(jnp.where(stable, out == ref_spikes, True))), "mismatch vs reference"
    assert bool(jnp.all((out == 0.0) | (out == 1.0)))

    print("KERNEL_OK")
</pallas_src>

<mosaic_0001>
module attributes {stable_mosaic.version = 11 : i64} {
  func.func @conv_pool_stats_kernel(%arg0: i32, %arg1: memref<16x144xbf16, #tpu.memory_space<vmem>>, %arg2: memref<144x512xbf16, #tpu.memory_space<vmem>>, %arg3: memref<1x512xi32, #tpu.memory_space<vmem>>, %arg4: memref<16x512xf32, #tpu.memory_space<vmem>>, %arg5: memref<16x512xbf16, #tpu.memory_space<vmem>>, %arg6: memref<1x2x16x1xf32, #tpu.memory_space<vmem>>) attributes {dimension_semantics = [#tpu.dimension_semantics<parallel>], iteration_bounds = array<i64: 1>, scalar_prefetch = 0 : i64, scratch_operands = 0 : i64, tpu.core_type = #tpu.core_type<tc>, window_params = [{pipeline_mode = #tpu.pipeline_mode<synchronous>, transform_indices = @transform_0, window_bounds = array<i64: 16, 144>}, {transform_indices = @transform_1, window_bounds = array<i64: 144, 512>}, {transform_indices = @transform_2, window_bounds = array<i64: 1, 512>}, {transform_indices = @transform_3, window_bounds = array<i64: 16, 512>}, {transform_indices = @transform_4, window_bounds = array<i64: 16, 512>}, {transform_indices = @transform_5, window_bounds = array<i64: 1, 2, 16, 1>}]} {
    %c0 = arith.constant 0 : index
    %c0_0 = arith.constant 0 : index
    %0 = vector.load %arg1[%c0, %c0_0] : memref<16x144xbf16, #tpu.memory_space<vmem>>, vector<16x144xbf16>
    %c0_1 = arith.constant 0 : index
    %c0_2 = arith.constant 0 : index
    %1 = vector.load %arg2[%c0_1, %c0_2] : memref<144x512xbf16, #tpu.memory_space<vmem>>, vector<144x512xbf16>
    %cst = arith.constant dense<0.000000e+00> : vector<16x512xf32>
    %2 = tpu.matmul %0, %1, %cst {dimension_numbers = #tpu.dot_dimension_numbers<[1], [0], [0], [1], [0, 0, 1, 1], [], []>} : vector<16x144xbf16>, vector<144x512xbf16>, vector<16x512xf32> -> vector<16x512xf32>
    %c0_3 = arith.constant 0 : index
    %c0_4 = arith.constant 0 : index
    %3 = vector.load %arg4[%c0_3, %c0_4] : memref<16x512xf32, #tpu.memory_space<vmem>>, vector<16x512xf32>
    tpu.vector_store %arg4[%c0_3, %c0_4], %2 {strides = array<i32>} : memref<16x512xf32, #tpu.memory_space<vmem>>, vector<16x512xf32>,
    %cst_5 = arith.constant dense<0.000000e+00> : vector<16xf32>
    %4 = vector.multi_reduction <add>, %2, %cst_5 [1] : vector<16x512xf32> to vector<16xf32>
    %5 = vector.shape_cast %4 : vector<16xf32> to vector<16x1xf32>
    %c0_6 = arith.constant 0 : index
    %c0_7 = arith.constant 0 : index
    %c0_8 = arith.constant 0 : index
    %c0_9 = arith.constant 0 : index
    %6 = vector.load %arg6[%c0_6, %c0_7, %c0_8, %c0_9] : memref<1x2x16x1xf32, #tpu.memory_space<vmem>>, vector<1x1x16x1xf32>
    %7 = vector.shape_cast %6 : vector<1x1x16x1xf32> to vector<16x1xf32>
    %8 = vector.shape_cast %5 : vector<16x1xf32> to vector<1x1x16x1xf32>
    tpu.vector_store %arg6[%c0_6, %c0_7, %c0_8, %c0_9], %8 {strides = array<i32>} : memref<1x2x16x1xf32, #tpu.memory_space<vmem>>, vector<1x1x16x1xf32>,
    %9 = arith.mulf %2, %2 : vector<16x512xf32>
    %cst_10 = arith.constant dense<0.000000e+00> : vector<16xf32>
    %10 = vector.multi_reduction <add>, %9, %cst_10 [1] : vector<16x512xf32> to vector<16xf32>
    %11 = vector.shape_cast %10 : vector<16xf32> to vector<16x1xf32>
    %c0_11 = arith.constant 0 : index
    %c1 = arith.constant 1 : index
    %c0_12 = arith.constant 0 : index
    %c0_13 = arith.constant 0 : index
    %12 = vector.load %arg6[%c0_11, %c1, %c0_12, %c0_13] : memref<1x2x16x1xf32, #tpu.memory_space<vmem>>, vector<1x1x16x1xf32>
    %13 = vector.shape_cast %12 : vector<1x1x16x1xf32> to vector<16x1xf32>
    %14 = vector.shape_cast %11 : vector<16x1xf32> to vector<1x1x16x1xf32>
    tpu.vector_store %arg6[%c0_11, %c1, %c0_12, %c0_13], %14 {strides = array<i32>} : memref<1x2x16x1xf32, #tpu.memory_space<vmem>>, vector<1x1x16x1xf32>,
    %c0_14 = arith.constant 0 : index
    %c0_15 = arith.constant 0 : index
    %15 = vector.load %arg3[%c0_14, %c0_15] : memref<1x512xi32, #tpu.memory_space<vmem>>, vector<1x512xi32>
    %cst_16 = arith.constant 0xFF80 : bf16
    %16 = vector.broadcast %cst_16 : bf16 to vector<16x512xbf16>
    %c0_i32 = arith.constant 0 : i32
    %17 = vector.broadcast %c0_i32 : i32 to vector<1x512xi32>
    %18 = arith.shrsi %15, %17 : vector<1x512xi32>
    %c1_i32 = arith.constant 1 : i32
    %19 = vector.broadcast %c1_i32 : i32 to vector<1x512xi32>
    %20 = arith.andi %18, %19 : vector<1x512xi32>
    %c0_i32_17 = arith.constant 0 : i32
    %21 = vector.broadcast %c0_i32_17 : i32 to vector<1x512xi32>
    %22 = arith.cmpi ne, %20, %21 : vector<1x512xi32>
    %c0_18 = arith.constant 0 : index
    %c0_19 = arith.constant 0 : index
    %23 = vector.load %arg2[%c0_18, %c0_19] : memref<144x512xbf16, #tpu.memory_space<vmem>>, vector<16x512xbf16>
    %cst_20 = arith.constant 0xFF80 : bf16
    %24 = vector.shape_cast %22 : vector<1x512xi1> to vector<1x512xi1>
    %25 = vector.broadcast %24 : vector<1x512xi1> to vector<16x512xi1>
    %26 = vector.broadcast %cst_20 : bf16 to vector<16x512xbf16>
    %27 = arith.select %25, %23, %26 : vector<16x512xi1>, vector<16x512xbf16>
    %28 = arith.maximumf %16, %27 : vector<16x512xbf16>
    %c1_i32_21 = arith.constant 1 : i32
    %29 = vector.broadcast %c1_i32_21 : i32 to vector<1x512xi32>
    %30 = arith.shrsi %15, %29 : vector<1x512xi32>
    %c1_i32_22 = arith.constant 1 : i32
    %31 = vector.broadcast %c1_i32_22 : i32 to vector<1x512xi32>
    %32 = arith.andi %30, %31 : vector<1x512xi32>
    %c0_i32_23 = arith.constant 0 : i32
    %33 = vector.broadcast %c0_i32_23 : i32 to vector<1x512xi32>
    %34 = arith.cmpi ne, %32, %33 : vector<1x512xi32>
    %c16 = arith.constant 16 : index
    %c0_24 = arith.constant 0 : index
    %35 = vector.load %arg2[%c16, %c0_24] : memref<144x512xbf16, #tpu.memory_space<vmem>>, vector<16x512xbf16>
    %cst_25 = arith.constant 0xFF80 : bf16
    %36 = vector.shape_cast %34 : vector<1x512xi1> to vector<1x512xi1>
    %37 = vector.broadcast %36 : vector<1x512xi1> to vector<16x512xi1>
    %38 = vector.broadcast %cst_25 : bf16 to vector<16x512xbf16>
    %39 = arith.select %37, %35, %38 : vector<16x512xi1>, vector<16x512xbf16>
    %40 = arith.maximumf %28, %39 : vector<16x512xbf16>
    %c2_i32 = arith.constant 2 : i32
    %41 = vector.broadcast %c2_i32 : i32 to vector<1x512xi32>
    %42 = arith.shrsi %15, %41 : vector<1x512xi32>
    %c1_i32_26 = arith.constant 1 : i32
    %43 = vector.broadcast %c1_i32_26 : i32 to vector<1x512xi32>
    %44 = arith.andi %42, %43 : vector<1x512xi32>
    %c0_i32_27 = arith.constant 0 : i32
    %45 = vector.broadcast %c0_i32_27 : i32 to vector<1x512xi32>
    %46 = arith.cmpi ne, %44, %45 : vector<1x512xi32>
    %c32 = arith.constant 32 : index
    %c0_28 = arith.constant 0 : index
    %47 = vector.load %arg2[%c32, %c0_28] : memref<144x512xbf16, #tpu.memory_space<vmem>>, vector<16x512xbf16>
    %cst_29 = arith.constant 0xFF80 : bf16
    %48 = vector.shape_cast %46 : vector<1x512xi1> to vector<1x512xi1>
    %49 = vector.broadcast %48 : vector<1x512xi1> to vector<16x512xi1>
    %50 = vector.broadcast %cst_29 : bf16 to vector<16x512xbf16>
    %51 = arith.select %49, %47, %50 : vector<16x512xi1>, vector<16x512xbf16>
    %52 = arith.maximumf %40, %51 : vector<16x512xbf16>
    %c3_i32 = arith.constant 3 : i32
    %53 = vector.broadcast %c3_i32 : i32 to vector<1x512xi32>
    %54 = arith.shrsi %15, %53 : vector<1x512xi32>
    %c1_i32_30 = arith.constant 1 : i32
    %55 = vector.broadcast %c1_i32_30 : i32 to vector<1x512xi32>
    %56 = arith.andi %54, %55 : vector<1x512xi32>
    %c0_i32_31 = arith.constant 0 : i32
    %57 = vector.broadcast %c0_i32_31 : i32 to vector<1x512xi32>
    %58 = arith.cmpi ne, %56, %57 : vector<1x512xi32>
    %c48 = arith.constant 48 : index
    %c0_32 = arith.constant 0 : index
    %59 = vector.load %arg2[%c48, %c0_32] : memref<144x512xbf16, #tpu.memory_space<vmem>>, vector<16x512xbf16>
    %cst_33 = arith.constant 0xFF80 : bf16
    %60 = vector.shape_cast %58 : vector<1x512xi1> to vector<1x512xi1>
    %61 = vector.broadcast %60 : vector<1x512xi1> to vector<16x512xi1>
    %62 = vector.broadcast %cst_33 : bf16 to vector<16x512xbf16>
    %63 = arith.select %61, %59, %62 : vector<16x512xi1>, vector<16x512xbf16>
    %64 = arith.maximumf %52, %63 : vector<16x512xbf16>
    %c4_i32 = arith.constant 4 : i32
    %65 = vector.broadcast %c4_i32 : i32 to vector<1x512xi32>
    %66 = arith.shrsi %15, %65 : vector<1x512xi32>
    %c1_i32_34 = arith.constant 1 : i32
    %67 = vector.broadcast %c1_i32_34 : i32 to vector<1x512xi32>
    %68 = arith.andi %66, %67 : vector<1x512xi32>
    %c0_i32_35 = arith.constant 0 : i32
    %69 = vector.broadcast %c0_i32_35 : i32 to vector<1x512xi32>
    %70 = arith.cmpi ne, %68, %69 : vector<1x512xi32>
    %c64 = arith.constant 64 : index
    %c0_36 = arith.constant 0 : index
    %71 = vector.load %arg2[%c64, %c0_36] : memref<144x512xbf16, #tpu.memory_space<vmem>>, vector<16x512xbf16>
    %cst_37 = arith.constant 0xFF80 : bf16
    %72 = vector.shape_cast %70 : vector<1x512xi1> to vector<1x512xi1>
    %73 = vector.broadcast %72 : vector<1x512xi1> to vector<16x512xi1>
    %74 = vector.broadcast %cst_37 : bf16 to vector<16x512xbf16>
    %75 = arith.select %73, %71, %74 : vector<16x512xi1>, vector<16x512xbf16>
    %76 = arith.maximumf %64, %75 : vector<16x512xbf16>
    %c5_i32 = arith.constant 5 : i32
    %77 = vector.broadcast %c5_i32 : i32 to vector<1x512xi32>
    %78 = arith.shrsi %15, %77 : vector<1x512xi32>
    %c1_i32_38 = arith.constant 1 : i32
    %79 = vector.broadcast %c1_i32_38 : i32 to vector<1x512xi32>
    %80 = arith.andi %78, %79 : vector<1x512xi32>
    %c0_i32_39 = arith.constant 0 : i32
    %81 = vector.broadcast %c0_i32_39 : i32 to vector<1x512xi32>
    %82 = arith.cmpi ne, %80, %81 : vector<1x512xi32>
    %c80 = arith.constant 80 : index
    %c0_40 = arith.constant 0 : index
    %83 = vector.load %arg2[%c80, %c0_40] : memref<144x512xbf16, #tpu.memory_space<vmem>>, vector<16x512xbf16>
    %cst_41 = arith.constant 0xFF80 : bf16
    %84 = vector.shape_cast %82 : vector<1x512xi1> to vector<1x512xi1>
    %85 = vector.broadcast %84 : vector<1x512xi1> to vector<16x512xi1>
    %86 = vector.broadcast %cst_41 : bf16 to vector<16x512xbf16>
    %87 = arith.select %85, %83, %86 : vector<16x512xi1>, vector<16x512xbf16>
    %88 = arith.maximumf %76, %87 : vector<16x512xbf16>
    %c6_i32 = arith.constant 6 : i32
    %89 = vector.broadcast %c6_i32 : i32 to vector<1x512xi32>
    %90 = arith.shrsi %15, %89 : vector<1x512xi32>
    %c1_i32_42 = arith.constant 1 : i32
    %91 = vector.broadcast %c1_i32_42 : i32 to vector<1x512xi32>
    %92 = arith.andi %90, %91 : vector<1x512xi32>
    %c0_i32_43 = arith.constant 0 : i32
    %93 = vector.broadcast %c0_i32_43 : i32 to vector<1x512xi32>
    %94 = arith.cmpi ne, %92, %93 : vector<1x512xi32>
    %c96 = arith.constant 96 : index
    %c0_44 = arith.constant 0 : index
    %95 = vector.load %arg2[%c96, %c0_44] : memref<144x512xbf16, #tpu.memory_space<vmem>>, vector<16x512xbf16>
    %cst_45 = arith.constant 0xFF80 : bf16
    %96 = vector.shape_cast %94 : vector<1x512xi1> to vector<1x512xi1>
    %97 = vector.broadcast %96 : vector<1x512xi1> to vector<16x512xi1>
    %98 = vector.broadcast %cst_45 : bf16 to vector<16x512xbf16>
    %99 = arith.select %97, %95, %98 : vector<16x512xi1>, vector<16x512xbf16>
    %100 = arith.maximumf %88, %99 : vector<16x512xbf16>
    %c7_i32 = arith.constant 7 : i32
    %101 = vector.broadcast %c7_i32 : i32 to vector<1x512xi32>
    %102 = arith.shrsi %15, %101 : vector<1x512xi32>
    %c1_i32_46 = arith.constant 1 : i32
    %103 = vector.broadcast %c1_i32_46 : i32 to vector<1x512xi32>
    %104 = arith.andi %102, %103 : vector<1x512xi32>
    %c0_i32_47 = arith.constant 0 : i32
    %105 = vector.broadcast %c0_i32_47 : i32 to vector<1x512xi32>
    %106 = arith.cmpi ne, %104, %105 : vector<1x512xi32>
    %c112 = arith.constant 112 : index
    %c0_48 = arith.constant 0 : index
    %107 = vector.load %arg2[%c112, %c0_48] : memref<144x512xbf16, #tpu.memory_space<vmem>>, vector<16x512xbf16>
    %cst_49 = arith.constant 0xFF80 : bf16
    %108 = vector.shape_cast %106 : vector<1x512xi1> to vector<1x512xi1>
    %109 = vector.broadcast %108 : vector<1x512xi1> to vector<16x512xi1>
    %110 = vector.broadcast %cst_49 : bf16 to vector<16x512xbf16>
    %111 = arith.select %109, %107, %110 : vector<16x512xi1>, vector<16x512xbf16>
    %112 = arith.maximumf %100, %111 : vector<16x512xbf16>
    %c8_i32 = arith.constant 8 : i32
    %113 = vector.broadcast %c8_i32 : i32 to vector<1x512xi32>
    %114 = arith.shrsi %15, %113 : vector<1x512xi32>
    %c1_i32_50 = arith.constant 1 : i32
    %115 = vector.broadcast %c1_i32_50 : i32 to vector<1x512xi32>
    %116 = arith.andi %114, %115 : vector<1x512xi32>
    %c0_i32_51 = arith.constant 0 : i32
    %117 = vector.broadcast %c0_i32_51 : i32 to vector<1x512xi32>
    %118 = arith.cmpi ne, %116, %117 : vector<1x512xi32>
    %c128 = arith.constant 128 : index
    %c0_52 = arith.constant 0 : index
    %119 = vector.load %arg2[%c128, %c0_52] : memref<144x512xbf16, #tpu.memory_space<vmem>>, vector<16x512xbf16>
    %cst_53 = arith.constant 0xFF80 : bf16
    %120 = vector.shape_cast %118 : vector<1x512xi1> to vector<1x512xi1>
    %121 = vector.broadcast %120 : vector<1x512xi1> to vector<16x512xi1>
    %122 = vector.broadcast %cst_53 : bf16 to vector<16x512xbf16>
    %123 = arith.select %121, %119, %122 : vector<16x512xi1>, vector<16x512xbf16>
    %124 = arith.maximumf %112, %123 : vector<16x512xbf16>
    %c0_54 = arith.constant 0 : index
    %c0_55 = arith.constant 0 : index
    %125 = vector.load %arg5[%c0_54, %c0_55] : memref<16x512xbf16, #tpu.memory_space<vmem>>, vector<16x512xbf16>
    tpu.vector_store %arg5[%c0_54, %c0_55], %124 {strides = array<i32>} : memref<16x512xbf16, #tpu.memory_space<vmem>>, vector<16x512xbf16>,
    return
  }
  func.func @transform_0(%arg0: i32) -> (i32, i32) {
    %c0_i32 = arith.constant 0 : i32
    %c0_i32_0 = arith.constant 0 : i32
    %c0_i32_1 = arith.constant 0 : i32
    return %c0_i32, %c0_i32_0 : i32, i32
  }
  func.func @transform_1(%arg0: i32) -> (i32, i32) {
    %c0_i32 = arith.constant 0 : i32
    %c0_i32_0 = arith.constant 0 : i32
    return %c0_i32, %arg0 : i32, i32
  }
  func.func @transform_2(%arg0: i32) -> (i32, i32) {
    %c0_i32 = arith.constant 0 : i32
    %c0_i32_0 = arith.constant 0 : i32
    return %c0_i32, %arg0 : i32, i32
  }
  func.func @transform_3(%arg0: i32) -> (i32, i32) {
    %c0_i32 = arith.constant 0 : i32
    %c0_i32_0 = arith.constant 0 : i32
    return %c0_i32, %arg0 : i32, i32
  }
  func.func @transform_4(%arg0: i32) -> (i32, i32) {
    %c0_i32 = arith.constant 0 : i32
    %c0_i32_0 = arith.constant 0 : i32
    return %c0_i32, %arg0 : i32, i32
  }
  func.func @transform_5(%arg0: i32) -> (i32, i32, i32, i32) {
    %c0_i32 = arith.constant 0 : i32
    %c0_i32_0 = arith.constant 0 : i32
    %c0_i32_1 = arith.constant 0 : i32
    %c0_i32_2 = arith.constant 0 : i32
    return %arg0, %c0_i32, %c0_i32_0, %c0_i32_1 : i32, i32, i32, i32
  }
}

</mosaic_0001>

<bundles_post_ra>
// kernel: tpu_custom_call.1
= control target key start
LH: loop header
LB: loop body
LE: loop exit
PB: predicated region body
PF: predicated region fallthrough
CT: control target
= control target key end

     0   :  { %11 = vsyncpa [#allocation3], 0  ;;  %s1386_s0 = inlined_call_operand.hbm [shape: bf16[16,144], index: 0, kind: input, shape index: {}]   ;;  %s1387_s1 = inlined_call_operand.hbm [shape: bf16[144,512], index: 1, kind: input, shape index: {}]   ;;  %s1388_s2 = inlined_call_operand.vmem [shape: s32[1,512], index: 2, kind: input, shape index: {}]   ;;  %s1389_s3 = inlined_call_operand.hbm [shape: f32[16,512], index: 3, kind: output, shape index: {0}]   ;;  %s1390_s4 = inlined_call_operand.hbm [shape: bf16[16,512], index: 4, kind: output, shape index: {1}]   ;;  %s1391_s5 = inlined_call_operand.vmem [shape: f32[1,2,16,1], index: 5, kind: output, shape index: {2}]  }
   0x1   :  { %12 = vsyncpa [#allocation6], 0 }
   0x2   :  { %13 = vsyncpa [#allocation4], 0 }
   0x3   :  { %14 = vsyncpa [#allocation9], 0  ;;  %s976_s18 = smov [#allocation2]   ;;  %s880_s22 = scalar_lea.hbm %s1386_s0, 256 }
   0x4   :  { %s20_s19 = sshll.u32 %s976_s18, 4  ;;  %p881_p0 = scmp.ne.s32.totalorder %s1386_s0, %s880_s22  ;;  %s21_s19 = int_to_ptr.vmem [resolvable:$true] %s20_s19 }
   0x5   :  { %p884_p1 = scmp.lt.u32.totalorder %s880_s22, %s1386_s0 }
   0x7   :  { %p886_p2 = pnand %p884_p1, %p881_p0 }
   0x9   :  { %889 = shalt.err (!%p886_p2)
}
   0xa   :  { %s890_s27 = scalar_lea.vmem %s21_s19, 256  ;;  %p895_p4 = scmp.lt.s32.totalorder %s21_s19, %s21_s19 }
   0xb   :  { %p891_p3 = scmp.ne.s32.totalorder %s21_s19, %s890_s27  ;;  %p896_p5 = scmp.lt.s32.totalorder %s890_s27, %s890_s27 }
   0xd   :  { %p897_p6 = por %p896_p5, %p895_p4 }
   0xf   :  { %p898_p7 = pnand %p897_p6, %p891_p3 }
  0x11   :  { %901 = shalt.err (!%p898_p7)
}
  0x12   :  { %s977_s28 = smov 128   ;;  %s978_s29 = smov 8  }
  0x13   :  { %26 = dma.hbm_to_vmem [thread:$0]  %s1386_s0, 256, %s21_s19, [#allocation3], %s977_s28, %s977_s28, %s978_s29  }
  0x14   :  { %s979_s7 = smov [#allocation5]   ;;  %s902_s11 = scalar_lea.hbm %s1387_s1, 4608 }
  0x15   :  { %s32_s8 = sshll.u32 %s979_s7, 4  ;;  %p903_p8 = scmp.ne.s32.totalorder %s1387_s1, %s902_s11  ;;  %s33_s8 = int_to_ptr.vmem [resolvable:$true] %s32_s8 }
  0x16   :  { %p906_p9 = scmp.lt.u32.totalorder %s902_s11, %s1387_s1 }
  0x18   :  { %p908_p10 = pnand %p906_p9, %p903_p8 }
  0x1a   :  { %911 = shalt.err (!%p908_p10)
}
  0x1b   :  { %s912_s16 = scalar_lea.vmem %s33_s8, 4608  ;;  %p917_p12 = scmp.lt.s32.totalorder %s33_s8, %s33_s8 }
  0x1c   :  { %p913_p11 = scmp.ne.s32.totalorder %s33_s8, %s912_s16  ;;  %p918_p13 = scmp.lt.s32.totalorder %s912_s16, %s912_s16 }
  0x1e   :  { %p919_p0 = por %p918_p13, %p917_p12 }
  0x20   :  { %p920_p1 = pnand %p919_p0, %p913_p11 }
  0x22   :  { %923 = shalt.err (!%p920_p1)
}
  0x23   :  { %s980_s0 = smov 256   ;;  %s981_s17 = smov 16  }
  0x24   :  { %38 = dma.hbm_to_vmem [thread:$0]  %s1387_s1, 4608, %s33_s8, [#allocation6], %s980_s0, %s980_s0, %s981_s17  }
  0x25   :  { %968 = dma.done.wait [#allocation3], 256  }
  0x26   :  { %969 = vsyncadd [#allocation3], 4294967040 }
  0x27   :  { %970 = dma.done.wait [#allocation6], 4608  }
  0x28   :  { %971 = vsyncadd [#allocation6], 4294962688  ;;  %v1044_v0 = vld [vmem:[#allocation5] sm:$0xff]  ;;  %v1046_v1 = vld [vmem:[#allocation5 + $0x10] sm:$0xff]  ;;  %vm276_vm0 = vcmask 130048  }
  0x29   :  { %v1048_v2 = vld [vmem:[#allocation5 + $0x8] sm:$0xff]  ;;  %v791_v3 = vcombine.high %v1044_v0, %v1046_v1  ;;  %v1052_v4 = vld [vmem:[#allocation5 + $0x18] sm:$0xff]  ;;  %v790_v5 = vcombine.low %v1044_v0, %v1046_v1  ;;  %v1056_v6 = vld [vmem:[#allocation5 + $0x20] sm:$0xff] }
  0x2a   :  { %v1058_v7 = vld [vmem:[#allocation5 + $0x30] sm:$0xff]  ;;  %v793_v8 = vcombine.high %v1048_v2, %v1052_v4  ;;  %v792_v9 = vcombine.low %v1048_v2, %v1052_v4  ;;  %v1066_v11 = vld [vmem:[#allocation5 + $0x28] sm:$0xff]  ;;  %v1068_v12 = vld [vmem:[#allocation5 + $0x38] sm:$0xff] }
  0x2b   :  { %v795_v10 = vcombine.high %v1056_v6, %v1058_v7  ;;  %v1070_v13 = vld [vmem:[#allocation5 + $0x40] sm:$0xff]  ;;  %280 = vmatprep.subr.bf16.mxu0 %v791_v3  ;;  %v797_v14 = vcombine.high %v1066_v11, %v1068_v12  ;;  %v1074_v15 = vld [vmem:[#allocation5 + $0x50] sm:$0xff]  ;;  %v1076_v16 = vld [vmem:[#allocation5 + $0x48] sm:$0xff]  ;;  %v794_v18 = vcombine.low %v1056_v6, %v1058_v7  ;;  %v796_v19 = vcombine.low %v1066_v11, %v1068_v12 }
  0x2c   :  { %v1078_v17 = vld [vmem:[#allocation5 + $0x58] sm:$0xff]  ;;  %323 = vmatprep.subr.bf16.mxu1 %v793_v8  ;;  %281 = vmatpush1.bf16.msra.mxu0 %v790_v5  ;;  %v799_v20 = vcombine.high %v1070_v13, %v1074_v15  ;;  %v1088_v22 = vld [vmem:[#allocation5 + $0x60] sm:$0xff]  ;;  %v1090_v23 = vld [vmem:[#allocation5 + $0x70] sm:$0xff]  ;;  %v798_v26 = vcombine.low %v1070_v13, %v1074_v15 }
  0x2d   :  { %324 = vmatpush1.bf16.msra.mxu1 %v792_v9  ;;  %282 = vmatprep.subr.bf16.mxu0 %v795_v10  ;;  %v801_v21 = vcombine.high %v1076_v16, %v1078_v17  ;;  %v1092_v24 = vld [vmem:[#allocation5 + $0x68] sm:$0xff]  ;;  %v1094_v25 = vld [vmem:[#allocation5 + $0x78] sm:$0xff]  ;;  %v800_v27 = vcombine.low %v1076_v16, %v1078_v17  ;;  %v803_v28 = vcombine.high %v1088_v22, %v1090_v23  ;;  %v1104_v30 = vld [vmem:[#allocation5 + $0x80] sm:$0xff] }
  0x2e   :  { %325 = vmatprep.subr.bf16.mxu1 %v797_v14  ;;  %v805_v29 = vcombine.high %v1092_v24, %v1094_v25  ;;  %v1106_v31 = vld [vmem:[#allocation5 + $0x90] sm:$0xff]  ;;  %v1108_v32 = vld [vmem:[#allocation5 + $0x88] sm:$0xff]  ;;  %v1110_v33 = vld [vmem:[#allocation5 + $0x98] sm:$0xff]  ;;  %v802_v34 = vcombine.low %v1088_v22, %v1090_v23  ;;  %v804_v35 = vcombine.low %v1092_v24, %v1094_v25 }
  0x2f   :  { %v807_v36 = vcombine.high %v1104_v30, %v1106_v31  ;;  %v879_v37 = vld [vmem:[#allocation2 + $0x4] ss:$8 sps:$4 sm:$0xff]   ;;  %v809_v38 = vcombine.high %v1108_v32, %v1110_v33  ;;  %v1120_v39 = vld [vmem:[#allocation5 + $0xa0] sm:$0xff]  ;;  %v1124_v41 = vld [vmem:[#allocation5 + $0xa8] sm:$0xff]  ;;  %v806_v43 = vcombine.low %v1104_v30, %v1106_v31  ;;  %v808_v44 = vcombine.low %v1108_v32, %v1110_v33 }
  0x30   :  { %283 = vmatpush1.bf16.msra.mxu0 %v794_v18  ;;  %v1122_v40 = vld [vmem:[#allocation5 + $0xb0] sm:$0xff]  ;;  %v1126_v42 = vld [vmem:[#allocation5 + $0xb8] sm:$0xff]  ;;  %826 = vmatprep.mubr.msk.bf16.mxu0 %vm276_vm0, %v879_v37  ;;  %v1136_v47 = vld [vmem:[#allocation5 + $0xc0] sm:$0xff] }
  0x31   :  { %326 = vmatpush1.bf16.msra.mxu1 %v796_v19  ;;  %284 = vmatprep.subr.bf16.mxu0 %v799_v20  ;;  %v811_v45 = vcombine.high %v1120_v39, %v1122_v40  ;;  %v813_v46 = vcombine.high %v1124_v41, %v1126_v42  ;;  %v1138_v48 = vld [vmem:[#allocation5 + $0xd0] sm:$0xff]  ;;  %v1140_v49 = vld [vmem:[#allocation5 + $0xc8] sm:$0xff]  ;;  %v1142_v50 = vld [vmem:[#allocation5 + $0xd8] sm:$0xff]  ;;  %v810_v51 = vcombine.low %v1120_v39, %v1122_v40 }
  0x32   :  { %327 = vmatprep.subr.bf16.mxu1 %v801_v21  ;;  %827 = vmatprep.mubr.msk.bf16.mxu1 %vm276_vm0, %v879_v37  ;;  %v812_v52 = vcombine.low %v1124_v41, %v1126_v42  ;;  %v815_v53 = vcombine.high %v1136_v47, %v1138_v48  ;;  %v817_v54 = vcombine.high %v1140_v49, %v1142_v50  ;;  %v1152_v55 = vld [vmem:[#allocation5 + $0xe0] sm:$0xff]  ;;  %v1154_v56 = vld [vmem:[#allocation5 + $0xf0] sm:$0xff]  ;;  %v1156_v57 = vld [vmem:[#allocation5 + $0xe8] sm:$0xff] }
  0x33   :  { %v1158_v58 = vld [vmem:[#allocation5 + $0xf8] sm:$0xff]  ;;  %v814_v59 = vcombine.low %v1136_v47, %v1138_v48  ;;  %v816_v60 = vcombine.low %v1140_v49, %v1142_v50  ;;  %v819_v61 = vcombine.high %v1152_v55, %v1154_v56  ;;  %v1168_v63 = vld [vmem:[#allocation5 + $0x100] sm:$0xff]  ;;  %v1170_v3 = vld [vmem:[#allocation5 + $0x110] sm:$0xff]  ;;  %v818_v9 = vcombine.low %v1152_v55, %v1154_v56 }
  0x34   :  { %285 = vmatpush1.bf16.msra.mxu0 %v798_v26  ;;  %v821_v62 = vcombine.high %v1156_v57, %v1158_v58  ;;  %1395 = vst [vmem:[#allocation14_spill] sm:$0xff] %v1170_v3  ;;  %v1172_v5 = vld [vmem:[#allocation5 + $0x108] sm:$0xff]  ;;  %v1174_v8 = vld [vmem:[#allocation5 + $0x118] sm:$0xff]  ;;  %v820_v10 = vcombine.low %v1156_v57, %v1158_v58  ;;  %v823_v14 = vcombine.high %v1168_v63, %v1170_v3 }
  0x35   :  { %328 = vmatpush1.bf16.msra.mxu1 %v800_v27  ;;  %286 = vmatprep.subr.bf16.mxu0 %v803_v28  ;;  %1396 = vst [vmem:[#allocation15_spill] sm:$0xff] %v1172_v5  ;;  %1397 = vst [vmem:[#allocation16_spill] sm:$0xff] %v1174_v8  ;;  %v825_v18 = vcombine.high %v1172_v5, %v1174_v8  ;;  %v822_v19 = vcombine.low %v1168_v63, %v1170_v3  ;;  %v877_v21 = vld [vmem:[#allocation2] ss:$8 sps:$4 sm:$0xff]  }
  0x36   :  { %329 = vmatprep.subr.bf16.mxu1 %v805_v29  ;;  %v824_v20 = vcombine.low %v1172_v5, %v1174_v8  ;;  %v1191_v27 = vld [vmem:[%s1388_s2] sm:$0xf]  ;;  %s983_s2 = smov [#allocation7]  }
  0x37   :  { %s755_s21 = sshll.u32 %s983_s2, 4  ;;  %s756_s21 = int_to_ptr.vmem [resolvable:$true] %s755_s21 }
  0x38   :  { %287 = vmatpush1.bf16.msra.mxu0 %v802_v34  ;;  %s924_s22 = scalar_lea.vmem %s756_s21, 1024  ;;  %p929_p3 = scmp.lt.s32.totalorder %s756_s21, %s756_s21 }
  0x39   :  { %330 = vmatpush1.bf16.msra.mxu1 %v804_v35  ;;  %288 = vmatprep.subr.bf16.mxu0 %v807_v36  ;;  %v416_v35 = vlaneseq  ;;  %p925_p2 = scmp.ne.s32.totalorder %s756_s21, %s924_s22  ;;  %p930_p4 = scmp.lt.s32.totalorder %s924_s22, %s924_s22 }
  0x3a   :  { %331 = vmatprep.subr.bf16.mxu1 %v809_v38 }
  0x3b   :  { %p931_p5 = por %p930_p4, %p929_p3 }
  0x3c   :  { %289 = vmatpush1.bf16.msra.mxu0 %v806_v43 }
  0x3d   :  { %332 = vmatpush1.bf16.msra.mxu1 %v808_v44  ;;  %290 = vmatprep.subr.bf16.mxu0 %v811_v45  ;;  %v442_v45 = vshra.s32 %v1191_v27, 1  ;;  %p932_p6 = pnand %p931_p5, %p925_p2 }
  0x3e   :  { %333 = vmatprep.subr.bf16.mxu1 %v813_v46 }
  0x40   :  { %291 = vmatpush1.bf16.msra.mxu0 %v810_v51 }
  0x41   :  { %334 = vmatpush1.bf16.msra.mxu1 %v812_v52  ;;  %292 = vmatprep.subr.bf16.mxu0 %v815_v53 }
  0x42   :  { %335 = vmatprep.subr.bf16.mxu1 %v817_v54  ;;  %v409_v54 = vand.u32 1, %v1191_v27 }
  0x44   :  { %293 = vmatpush1.bf16.msra.mxu0 %v814_v59  ;;  %v417_v59 = vshrl.u32 %v416_v35, 7  ;;  %vm410_vm1 = vcmp.ne.s32.totalorder %v409_v54, 0  ;;  %v480_v54 = vshra.s32 %v1191_v27, 2 }
  0x45   :  { %336 = vmatpush1.bf16.msra.mxu1 %v816_v60  ;;  %294 = vmatprep.subr.bf16.mxu0 %v819_v61 }
  0x46   :  { %337 = vmatprep.subr.bf16.mxu1 %v821_v62  ;;  %v1196_v5 = vsub.s32 0, %v417_v59  ;;  %v1198_v35 = vsub.s32 1, %v417_v59  ;;  %v1200_v3 = vsub.s32 2, %v417_v59 }
  0x48   :  { %295 = vmatpush1.bf16.msra.mxu0 %v818_v9 }
  0x49   :  { %338 = vmatpush1.bf16.msra.mxu1 %v820_v10  ;;  %296 = vmatprep.subr.bf16.mxu0 %v823_v14 }
  0x4a   :  { %339 = vmatprep.subr.bf16.mxu1 %v825_v18 }
  0x4c   :  { %297 = vmatpush1.bf16.msra.mxu0 %v822_v19 }
  0x4d   :  { %340 = vmatpush1.bf16.msra.mxu1 %v824_v20 }
  0x4f   :  { %313 = vmatmul.mubr.bf16.vlgmr.msra.gmra.mrb[0].mxu0 %v877_v21 }
  0x50   :  { %356 = vmatmul.mubr.bf16.vlgmr.msra.gmra.mrb[0].mxu1 %v877_v21 }
 0x122   :  { %v314_v26 = vpop.f32.mrb[0].mxu0 }
 0x123   :  { %366 = vst [vmem:[#allocation7] sm:$0xff] %v314_v26  ;;  %v387_v28 = vmul.f32 %v314_v26, %v314_v26  ;;  %v357_v29 = vpop.f32.mrb[0].mxu1  ;;  %v316_v34 = vpop.f32.mrb[1].mxu0 }
 0x124   :  { %368 = vst [vmem:[#allocation7 + $0x10] sm:$0xff] %v357_v29  ;;  %v389_v36 = vmul.f32 %v357_v29, %v357_v29  ;;  %367 = vst [vmem:[#allocation7 + $0x8] sm:$0xff] %v316_v34  ;;  %v374_v37 = vadd.f32 %v316_v34, %v314_v26  ;;  %v388_v38 = vmul.f32 %v316_v34, %v316_v34  ;;  %v359_v43 = vpop.f32.mrb[1].mxu1  ;;  %v318_v44 = vpop.f32.mrb[2].mxu0  ;;  %v982_v26 = vmov 0  }
 0x125   :  { %369 = vst [vmem:[#allocation7 + $0x18] sm:$0xff] %v359_v43  ;;  %370 = vst [vmem:[#allocation7 + $0x20] sm:$0xff] %v318_v44  ;;  %v391_v46 = vmul.f32 %v318_v44, %v318_v44  ;;  %v361_v51 = vpop.f32.mrb[2].mxu1  ;;  %v320_v52 = vpop.f32.mrb[3].mxu0  ;;  %v390_v53 = vmul.f32 %v359_v43, %v359_v43  ;;  %v415_v34 = vsel %vm410_vm1, 1, %v982_v26 }
 0x126   :  { %372 = vst [vmem:[#allocation7 + $0x30] sm:$0xff] %v361_v51  ;;  %v393_v60 = vmul.f32 %v361_v51, %v361_v51  ;;  %371 = vst [vmem:[#allocation7 + $0x28] sm:$0xff] %v320_v52  ;;  %v379_v61 = vadd.f32 %v320_v52, %v318_v44  ;;  %v392_v62 = vmul.f32 %v320_v52, %v320_v52  ;;  %v363_v9 = vpop.f32.mrb[3].mxu1 }
 0x127   :  { %v375_v10 = vadd.f32 %v374_v37, %v357_v29  ;;  %373 = vst [vmem:[#allocation7 + $0x38] sm:$0xff] %v363_v9  ;;  %v394_v14 = vmul.f32 %v363_v9, %v363_v9  ;;  %v395_v18 = vadd.f32 %v388_v38, %v387_v28  ;;  %v1202_v37 = vsub.s32 3, %v417_v59 }
 0x128   :  { %v400_v19 = vadd.f32 %v392_v62, %v391_v46  ;;  %v380_v21 = vadd.f32 %v379_v61, %v361_v51  ;;  %v443_v28 = vand.u32 1, %v442_v45  ;;  %v423_v46 = vrot.slane %v415_v34, %v1198_v35 }
 0x129   :  { %v376_v20 = vadd.f32 %v375_v10, %v359_v43  ;;  %v396_v8 = vadd.f32 %v395_v18, %v389_v36  ;;  %v419_v43 = vrot.slane %v415_v34, %v1196_v5  ;;  %v427_v51 = vrot.slane %v415_v34, %v1200_v3 }
 0x12a   :  { %v381_v44 = vadd.f32 %v380_v21, %v363_v9  ;;  %v401_v29 = vadd.f32 %v400_v19, %v393_v60  ;;  %v431_v52 = vrot.slane %v415_v34, %v1202_v37  ;;  %vm444_vm2 = vcmp.ne.s32.totalorder %v443_v28, 0 }
 0x12b   :  { %377 = vadd.xlane.f32.xlu0 %v376_v20  ;;  %v397_v38 = vadd.f32 %v396_v8, %v390_v53  ;;  %vm432_vm3 = vcmp.eq.s32.totalorder %v419_v43, 1  ;;  %vm433_vm4 = vcmp.eq.s32.totalorder %v423_v46, 1  ;;  %vm434_vm5 = vcmp.eq.s32.totalorder %v427_v51, 1 }
 0x12c   :  { %v402_v36 = vadd.f32 %v401_v29, %v394_v14  ;;  %v449_v59 = vsel %vm444_vm2, 1, %v982_v26  ;;  %vm435_vm6 = vcmp.eq.s32.totalorder %v431_v52, 1  ;;  %vm436_vm7 = vmpackc.low %vm433_vm4, %vm432_vm3  ;;  %v481_v9 = vand.u32 1, %v480_v54 }
 0x12d   :  { %398 = vadd.xlane.f32.xlu1 %v397_v38  ;;  %v453_v8 = vrot.slane %v449_v59, %v1196_v5  ;;  %v457_v45 = vrot.slane %v449_v59, %v1198_v35  ;;  %v461_v53 = vrot.slane %v449_v59, %v1200_v3  ;;  %vm437_vm8 = vmpackc.low %vm435_vm6, %vm434_vm5  ;;  %v438_v60 = vsel %vm436_vm7, %v1044_v0, 4286644096 }
 0x12e   :  { %v440_v61 = vsel %vm436_vm7, %v1046_v1, 4286644096  ;;  %v465_v62 = vrot.slane %v449_v59, %v1202_v37  ;;  %v439_v10 = vsel %vm437_vm8, %v1048_v2, 4286644096  ;;  %v441_v14 = vsel %vm437_vm8, %v1052_v4, 4286644096 }
 0x12f   :  { %382 = vadd.xlane.f32.xlu0 %v381_v44  ;;  %vm466_vm9 = vcmp.eq.s32.totalorder %v453_v8, 1  ;;  %vm467_vm10 = vcmp.eq.s32.totalorder %v457_v45, 1  ;;  %vm468_vm11 = vcmp.eq.s32.totalorder %v461_v53, 1  ;;  %vm482_vm14 = vcmp.ne.s32.totalorder %v481_v9, 0 }
 0x130   :  { %vm469_vm12 = vcmp.eq.s32.totalorder %v465_v62, 1  ;;  %vm470_vm13 = vmpackc.low %vm467_vm10, %vm466_vm9  ;;  %v518_v18 = vshra.s32 %v1191_v27, 3  ;;  %v487_v19 = vsel %vm482_vm14, 1, %v982_v26  ;;  %v556_v2 = vshra.s32 %v1191_v27, 4 }
 0x131   :  { %403 = vadd.xlane.f32.xlu1 %v402_v36  ;;  %vm471_vm15 = vmpackc.low %vm469_vm12, %vm468_vm11  ;;  %v472_v0 = vsel %vm470_vm13, %v1056_v6, 4286644096  ;;  %v474_v1 = vsel %vm470_vm13, %v1058_v7, 4286644096  ;;  %v491_v28 = vrot.slane %v487_v19, %v1196_v5  ;;  %v495_v38 = vrot.slane %v487_v19, %v1198_v35 }
 0x132   :  { %v473_v4 = vsel %vm471_vm15, %v1066_v11, 4286644096  ;;  %v475_v20 = vsel %vm471_vm15, %v1068_v12, 4286644096  ;;  %v476_v21 = vmax.bf16 %v472_v0, %v438_v60  ;;  %v478_v34 = vmax.bf16 %v474_v1, %v440_v61 }
 0x133   :  { %v477_v44 = vmax.bf16 %v473_v4, %v439_v10  ;;  %v479_v29 = vmax.bf16 %v475_v20, %v441_v14  ;;  %v499_v6 = vrot.slane %v487_v19, %v1200_v3  ;;  %v503_v7 = vrot.slane %v487_v19, %v1202_v37 }
 0x134   :  { %v519_v43 = vand.u32 1, %v518_v18  ;;  %v557_v46 = vand.u32 1, %v556_v2  ;;  %vm504_vm0 = vcmp.eq.s32.totalorder %v491_v28, 1  ;;  %vm505_vm1 = vcmp.eq.s32.totalorder %v495_v38, 1 }
 0x135   :  { %v594_v11 = vshra.s32 %v1191_v27, 5  ;;  %v632_v12 = vshra.s32 %v1191_v27, 6  ;;  %vm506_vm2 = vcmp.eq.s32.totalorder %v499_v6, 1  ;;  %vm507_vm3 = vcmp.eq.s32.totalorder %v503_v7, 1  ;;  %vm508_vm4 = vmpackc.low %vm505_vm1, %vm504_vm0 }
 0x136   :  { %vm520_vm5 = vcmp.ne.s32.totalorder %v519_v43, 0  ;;  %vm558_vm6 = vcmp.ne.s32.totalorder %v557_v46, 0  ;;  %vm509_vm7 = vmpackc.low %vm507_vm3, %vm506_vm2  ;;  %v510_v51 = vsel %vm508_vm4, %v1070_v13, 4286644096  ;;  %v512_v36 = vsel %vm508_vm4, %v1074_v15, 4286644096 }
 0x137   :  { %v525_v52 = vsel %vm520_vm5, 1, %v982_v26  ;;  %v563_v54 = vsel %vm558_vm6, 1, %v982_v26  ;;  %v511_v59 = vsel %vm509_vm7, %v1076_v16, 4286644096  ;;  %v513_v8 = vsel %vm509_vm7, %v1078_v17, 4286644096 }
 0x138   :  { %v514_v45 = vmax.bf16 %v510_v51, %v476_v21  ;;  %v516_v53 = vmax.bf16 %v512_v36, %v478_v34  ;;  %v515_v60 = vmax.bf16 %v511_v59, %v477_v44  ;;  %v517_v61 = vmax.bf16 %v513_v8, %v479_v29 }
 0x139   :  { %v529_v62 = vrot.slane %v525_v52, %v1196_v5  ;;  %v533_v9 = vrot.slane %v525_v52, %v1198_v35  ;;  %v537_v13 = vrot.slane %v525_v52, %v1200_v3  ;;  %v541_v15 = vrot.slane %v525_v52, %v1202_v37 }
 0x13a   :  { %v567_v10 = vrot.slane %v563_v54, %v1196_v5  ;;  %v571_v14 = vrot.slane %v563_v54, %v1198_v35  ;;  %v575_v16 = vrot.slane %v563_v54, %v1200_v3  ;;  %v579_v17 = vrot.slane %v563_v54, %v1202_v37 }
 0x13b   :  { %vm542_vm8 = vcmp.eq.s32.totalorder %v529_v62, 1  ;;  %vm543_vm9 = vcmp.eq.s32.totalorder %v533_v9, 1  ;;  %vm544_vm10 = vcmp.eq.s32.totalorder %v537_v13, 1  ;;  %vm545_vm11 = vcmp.eq.s32.totalorder %v541_v15, 1 }
 0x13c   :  { %vm546_vm12 = vmpackc.low %vm543_vm9, %vm542_vm8  ;;  %vm1245_vm13 = vcmp.eq.s32.totalorder %v567_v10, 1  ;;  %vm1249_vm14 = vcmp.eq.s32.totalorder %v571_v14, 1  ;;  %vm1255_vm0 = vcmp.eq.s32.totalorder %v575_v16, 1 }
 0x13d   :  { %vm547_vm15 = vmpackc.low %vm545_vm11, %vm544_vm10  ;;  %v548_v1 = vsel %vm546_vm12, %v1088_v22, 4286644096  ;;  %v550_v19 = vsel %vm546_vm12, %v1090_v23, 4286644096 }
 0x13e   :  { %v549_v4 = vsel %vm547_vm15, %v1092_v24, 4286644096  ;;  %v551_v20 = vsel %vm547_vm15, %v1094_v25, 4286644096  ;;  %v552_v21 = vmax.bf16 %v548_v1, %v514_v45  ;;  %v554_v34 = vmax.bf16 %v550_v19, %v516_v53  ;;  %vm584_vm1 = vmpackc.low %vm1249_vm14, %vm1245_vm13 }
 0x13f   :  { %935 = shalt.err (!%p932_p6)
}
 0x140   :  { %s936_s25 = scalar_lea.hbm %s1389_s3, 1024 }
 0x141   :  { %p937_p7 = scmp.ne.s32.totalorder %s1389_s3, %s936_s25  ;;  %p940_p8 = scmp.lt.u32.totalorder %s936_s25, %s1389_s3 }
 0x143   :  { %p942_p9 = pnand %p940_p8, %p937_p7 }
 0x145   :  { %945 = shalt.err (!%p942_p9)
}
 0x146   :  { %s984_s30 = smov 512   ;;  %s985_s6 = smov 32   ;;  %v553_v22 = vmax.bf16 %v549_v4, %v515_v60  ;;  %v555_v23 = vmax.bf16 %v551_v20, %v517_v61  ;;  %vm583_vm2 = vcmp.eq.s32.totalorder %v579_v17, 1  ;;  %v586_v24 = vsel %vm584_vm1, %v1104_v30, 4286644096 }
 0x147   :  { %761 = dma.vmem_to_hbm [thread:$0]  %s756_s21, 1024, %s1389_s3, [#allocation4], %s984_s30, %s984_s30, %s985_s6   ;;  %vm585_vm3 = vmpackc.low %vm583_vm2, %vm1255_vm0  ;;  %v588_v25 = vsel %vm584_vm1, %v1106_v31, 4286644096  ;;  %v590_v44 = vmax.bf16 %v586_v24, %v552_v21  ;;  %v595_v29 = vand.u32 1, %v594_v11  ;;  %v633_v28 = vand.u32 1, %v632_v12 }
 0x148   :  { %v587_v38 = vsel %vm585_vm3, %v1108_v32, 4286644096  ;;  %v589_v30 = vsel %vm585_vm3, %v1110_v33, 4286644096  ;;  %v592_v6 = vmax.bf16 %v588_v25, %v554_v34  ;;  %v670_v7 = vshra.s32 %v1191_v27, 7  ;;  %s986_s3 = smov [#allocation8]  }
 0x149   :  { %v591_v43 = vmax.bf16 %v587_v38, %v553_v22  ;;  %v593_v46 = vmax.bf16 %v589_v30, %v555_v23  ;;  %vm596_vm4 = vcmp.ne.s32.totalorder %v595_v29, 0  ;;  %vm634_vm5 = vcmp.ne.s32.totalorder %v633_v28, 0  ;;  %s767_s9 = sshll.u32 %s986_s3, 4  ;;  %s768_s9 = int_to_ptr.vmem [resolvable:$true] %s767_s9 }
 0x14a   :  { %v601_v31 = vsel %vm596_vm4, 1, %v982_v26  ;;  %v639_v51 = vsel %vm634_vm5, 1, %v982_v26  ;;  %v671_v36 = vand.u32 1, %v670_v7  ;;  %v708_v11 = vshra.s32 %v1191_v27, 8  ;;  %s946_s10 = scalar_lea.vmem %s768_s9, 512  ;;  %p951_p11 = scmp.lt.s32.totalorder %s768_s9, %s768_s9 }
 0x14b   :  { %v605_v12 = vrot.slane %v601_v31, %v1196_v5  ;;  %v609_v32 = vrot.slane %v601_v31, %v1198_v35  ;;  %v613_v33 = vrot.slane %v601_v31, %v1200_v3  ;;  %v617_v52 = vrot.slane %v601_v31, %v1202_v37  ;;  %p947_p10 = scmp.ne.s32.totalorder %s768_s9, %s946_s10  ;;  %p952_p12 = scmp.lt.s32.totalorder %s946_s10, %s946_s10 }
 0x14c   :  { %v643_v54 = vrot.slane %v639_v51, %v1196_v5  ;;  %v647_v59 = vrot.slane %v639_v51, %v1198_v35  ;;  %v651_v8 = vrot.slane %v639_v51, %v1200_v3  ;;  %v655_v45 = vrot.slane %v639_v51, %v1202_v37 }
 0x14d   :  { %vm618_vm6 = vcmp.eq.s32.totalorder %v605_v12, 1  ;;  %vm619_vm7 = vcmp.eq.s32.totalorder %v609_v32, 1  ;;  %vm620_vm8 = vcmp.eq.s32.totalorder %v613_v33, 1  ;;  %vm621_vm9 = vcmp.eq.s32.totalorder %v617_v52, 1  ;;  %p953_p13 = por %p952_p12, %p951_p11 }
 0x14e   :  { %vm622_vm10 = vmpackc.low %vm619_vm7, %vm618_vm6  ;;  %vm1309_vm11 = vcmp.eq.s32.totalorder %v643_v54, 1  ;;  %vm1313_vm12 = vcmp.eq.s32.totalorder %v647_v59, 1  ;;  %vm1317_vm13 = vcmp.eq.s32.totalorder %v651_v8, 1  ;;  %vm1321_vm14 = vcmp.eq.s32.totalorder %v655_v45, 1 }
 0x14f   :  { %vm623_vm15 = vmpackc.low %vm621_vm9, %vm620_vm8  ;;  %v624_v62 = vsel %vm622_vm10, %v1120_v39, 4286644096  ;;  %v626_v9 = vsel %vm622_vm10, %v1122_v40, 4286644096  ;;  %v709_v13 = vand.u32 1, %v708_v11  ;;  %vm672_vm1 = vcmp.ne.s32.totalorder %v671_v36, 0  ;;  %p954_p0 = pnand %p953_p13, %p947_p10 }
 0x150   :  { %v625_v15 = vsel %vm623_vm15, %v1124_v41, 4286644096  ;;  %v627_v10 = vsel %vm623_vm15, %v1126_v42, 4286644096  ;;  %v628_v14 = vmax.bf16 %v624_v62, %v590_v44  ;;  %vm660_vm0 = vmpackc.low %vm1313_vm12, %vm1309_vm11  ;;  %v630_v17 = vmax.bf16 %v626_v9, %v592_v6 }
 0x151   :  { %v629_v16 = vmax.bf16 %v625_v15, %v591_v43  ;;  %v631_v18 = vmax.bf16 %v627_v10, %v593_v46  ;;  %vm661_vm2 = vmpackc.low %vm1321_vm14, %vm1317_vm13  ;;  %v662_v39 = vsel %vm660_vm0, %v1136_v47, 4286644096  ;;  %v664_v41 = vsel %vm660_vm0, %v1138_v48, 4286644096 }
 0x152   :  { %v663_v40 = vsel %vm661_vm2, %v1140_v49, 4286644096  ;;  %v665_v42 = vsel %vm661_vm2, %v1142_v50, 4286644096  ;;  %v666_v0 = vmax.bf16 %v662_v39, %v628_v14  ;;  %v677_v1 = vsel %vm672_vm1, 1, %v982_v26 }
 0x153   :  { %vm710_vm3 = vcmp.ne.s32.totalorder %v709_v13, 0  ;;  %v681_v19 = vrot.slane %v677_v1, %v1196_v5  ;;  %v685_v2 = vrot.slane %v677_v1, %v1198_v35  ;;  %v689_v4 = vrot.slane %v677_v1, %v1200_v3 }
 0x154   :  { %v693_v20 = vrot.slane %v677_v1, %v1202_v37  ;;  %v667_v21 = vmax.bf16 %v663_v40, %v629_v16  ;;  %v668_v47 = vmax.bf16 %v664_v41, %v630_v17  ;;  %v669_v34 = vmax.bf16 %v665_v42, %v631_v18 }
 0x155   :  { %v715_v49 = vsel %vm710_vm3, 1, %v982_v26  ;;  %vm694_vm4 = vcmp.eq.s32.totalorder %v681_v19, 1  ;;  %vm695_vm5 = vcmp.eq.s32.totalorder %v685_v2, 1  ;;  %vm696_vm6 = vcmp.eq.s32.totalorder %v689_v4, 1 }
 0x156   :  { %vm697_vm7 = vcmp.eq.s32.totalorder %v693_v20, 1  ;;  %vm698_vm8 = vmpackc.low %vm695_vm5, %vm694_vm4  ;;  %v719_v48 = vrot.slane %v715_v49, %v1196_v5  ;;  %v723_v50 = vrot.slane %v715_v49, %v1198_v35  ;;  %v727_v22 = vrot.slane %v715_v49, %v1200_v3  ;;  %v1412_v3 = vld [vmem:[#allocation14_spill] sm:$0xff]  ;;  %v1413_v5 = vld [vmem:[#allocation15_spill] sm:$0xff] }
 0x157   :  { %v731_v23 = vrot.slane %v715_v49, %v1202_v37  ;;  %vm699_vm9 = vmpackc.low %vm697_vm7, %vm696_vm6  ;;  %v700_v24 = vsel %vm698_vm8, %v1152_v55, 4286644096  ;;  %v702_v25 = vsel %vm698_vm8, %v1154_v56, 4286644096  ;;  %v1414_v35 = vld [vmem:[#allocation16_spill] sm:$0xff] }
 0x158   :  { %v701_v26 = vsel %vm699_vm9, %v1156_v57, 4286644096  ;;  %v703_v44 = vsel %vm699_vm9, %v1158_v58, 4286644096  ;;  %v704_v29 = vmax.bf16 %v700_v24, %v666_v0  ;;  %v706_v28 = vmax.bf16 %v702_v25, %v668_v47 }
 0x159   :  { %v705_v38 = vmax.bf16 %v701_v26, %v667_v21  ;;  %v707_v30 = vmax.bf16 %v703_v44, %v669_v34  ;;  %vm732_vm10 = vcmp.eq.s32.totalorder %v719_v48, 1  ;;  %vm733_vm11 = vcmp.eq.s32.totalorder %v723_v50, 1 }
 0x15a   :  { %vm734_vm12 = vcmp.eq.s32.totalorder %v727_v22, 1  ;;  %vm735_vm13 = vcmp.eq.s32.totalorder %v731_v23, 1  ;;  %vm736_vm14 = vmpackc.low %vm733_vm11, %vm732_vm10 }
 0x15b   :  { %vm737_vm15 = vmpackc.low %vm735_vm13, %vm734_vm12  ;;  %v738_v55 = vsel %vm736_vm14, %v1168_v63, 4286644096  ;;  %v740_v56 = vsel %vm736_vm14, %v1412_v3, 4286644096 }
 0x15c   :  { %v739_v57 = vsel %vm737_vm15, %v1413_v5, 4286644096  ;;  %v741_v58 = vsel %vm737_vm15, %v1414_v35, 4286644096  ;;  %v742_v37 = vmax.bf16 %v738_v55, %v704_v29  ;;  %v744_v6 = vmax.bf16 %v740_v56, %v706_v28 }
 0x15d   :  { %v743_v7 = vmax.bf16 %v739_v57, %v705_v38  ;;  %v745_v43 = vmax.bf16 %v741_v58, %v707_v30 }
 0x15e   :  { %746 = vst [vmem:[#allocation8] sm:$0xff] %v742_v37  ;;  %748 = vst [vmem:[#allocation8 + $0x10] sm:$0xff] %v744_v6 }
 0x15f   :  { %747 = vst [vmem:[#allocation8 + $0x8] sm:$0xff] %v743_v7  ;;  %749 = vst [vmem:[#allocation8 + $0x18] sm:$0xff] %v745_v43 }
 0x160   :  { %957 = shalt.err (!%p954_p0)
}
 0x161   :  { %s958_s13 = scalar_lea.hbm %s1390_s4, 512 }
 0x162   :  { %p959_p1 = scmp.ne.s32.totalorder %s1390_s4, %s958_s13  ;;  %p962_p2 = scmp.lt.u32.totalorder %s958_s13, %s1390_s4 }
 0x164   :  { %p964_p3 = pnand %p962_p2, %p959_p1 }
 0x166   :  { %967 = shalt.err (!%p964_p3)
}
 0x167   :  { %773 = dma.vmem_to_hbm [thread:$0]  %s768_s9, 512, %s1390_s4, [#allocation9], %s980_s0, %s980_s0, %s981_s17   ;;  %vm384_vm0 = vcmask 7168  }
 0x1b8   :  { %v378_v63 = vpop.xlane.xlu0 %377 }
 0x1b9   :  { %385 = vst.msk [vmem:[%s1391_s5] sm:$0xff] %vm384_vm0, %v378_v63 }
 0x1ba   :  { %v399_v46 = vpop.xlane.xlu1 %398 }
 0x1bb   :  { %828 = vst.msk [vmem:[%s1391_s5 + $0x10] sm:$0xff] %vm384_vm0, %v399_v46 }
 0x1bc   :  { %v383_v31 = vpop.xlane.xlu0 %382 }
 0x1bd   :  { %386 = vst.msk [vmem:[%s1391_s5 + $0x8] sm:$0xff] %vm384_vm0, %v383_v31 }
 0x1be   :  { %v404_v51 = vpop.xlane.xlu1 %403 }
 0x1bf   :  { %829 = vst.msk [vmem:[%s1391_s5 + $0x18] sm:$0xff] %vm384_vm0, %v404_v51 }
 0x1c0   :  { %972 = dma.done.wait [#allocation4], 1024  }
 0x1c1   :  { %973 = vsyncadd [#allocation4], 4294966272 }
 0x1c2   :  { %974 = dma.done.wait [#allocation9], 512  }
 0x1c3   :  { %975 = vsyncadd [#allocation9], 4294966784 }
 0x1c4   :  { %784 = vsyncpa [#allocation3], 1 }
 0x1c5   :  { %785 = vsyncpa [#allocation6], 1 }
 0x1c6   :  { %786 = vsyncpa [#allocation4], 1 }
 0x1c7   :  { %787 = vsyncpa [#allocation9], 1 }

</bundles_post_ra>
